<compile_context>
chip_gen: v7x
topology: tpu7x:2x2x1
jax: 0.10.0
libtpu: 0.0.40
codegen_flags: <defaults>
</compile_context>

<pallas_src>
import functools

import jax
import jax.numpy as jnp
import numpy as np
from jax.experimental import pallas as pl
from jax.experimental.pallas import tpu as pltpu

LANES = 128  # lane width of a vreg


def _default_num_cores():
    """2-way 'parallel' sharding only where there are 2 TensorCores (v7x); else 1."""
    try:
        kind = jax.devices()[0].device_kind.lower()
    except Exception:
        return 1
    return 2 if ("v7" in kind or "7x" in kind) else 1


def _ilp_scan_kernel(lowtab_ref, high_ref, idx_ref, sol_ref, cost_ref,
                     best_cost_sc, best_idx_sc, *, n, tile_p, tiles_per_core):
    """Scan one tile of candidates; keep running (masked cost, index) minimum.

    lowtab_ref : (n+1, tile_p//128, 128)  tile-invariant  A_low.x_low + b (rows 0..n-1)
                                          and c_low.x_low (row n), candidate-dense layout.
    high_ref   : (K8, 128)                per-tile per-row constant (high-bit contribution),
                                          replicated across lanes.
    idx_ref    : (tile_p//128, 128) int32 candidate index within the tile.
    """
    cc = pl.program_id(0)          # shard (only >1 on v7x)
    t = pl.program_id(1)           # enumeration tile within the shard

    @pl.when(t == 0)
    def _init():
        best_cost_sc[...] = jnp.full_like(best_cost_sc, jnp.inf)
        best_idx_sc[...] = jnp.zeros_like(best_idx_sc)

    # Constraint violation sum_k |A_k . x + b_k|, accumulated row by row (n is tiny).
    viol = jnp.abs(lowtab_ref[0] + high_ref[0:1, :])
    for k in range(1, n):
        viol = viol + jnp.abs(lowtab_ref[k] + high_ref[k:k + 1, :])
    cost = lowtab_ref[n] + high_ref[n:n + 1, :]                 # (tile_p//128, 128)

    masked = jnp.where(viol <= 1e-4, cost, jnp.inf)             # A x + b == 0 within tol

    tile_min = jnp.min(masked)                                  # scalar
    first = jnp.min(jnp.where(masked == tile_min, idx_ref[...], tile_p))  # first-index tiebreak

    base = (cc * tiles_per_core + t) * tile_p
    better = tile_min < best_cost_sc[...]                       # (1, 1) bool
    best_cost_sc[...] = jnp.where(better, tile_min, best_cost_sc[...])
    best_idx_sc[...] = jnp.where(better, base + first, best_idx_sc[...])

    @pl.when(t == tiles_per_core - 1)
    def _finalize():
        idx = best_idx_sc[...]                                  # (1, 1) int32
        lane = jnp.minimum(jax.lax.broadcasted_iota(jnp.int32, (1, LANES), 1), 31)
        sol_ref[...] = ((idx >> lane) & 1).astype(jnp.float32)  # reconstruct best x
        cost_ref[...] = best_cost_sc[...]                       # inf if shard infeasible


def shortest_path_forward(A, b, c, target="cost", tile_p=None, num_cores=None):
    """JAX/Pallas equivalent of ShortestPath.forward(A, b, c)."""
    A = jnp.asarray(A, jnp.float32)                             # (n, m)
    n, m = A.shape
    assert 7 <= m <= 24, "exhaustive ILP enumeration: need 7 <= m <= 24"
    b_vec = jnp.asarray(b, jnp.float32).reshape(n)
    c_row = jnp.asarray(c, jnp.float32).reshape(1, -1)          # c.view(1, -1)

    if num_cores is None:
        num_cores = _default_num_cores()
    num_cores = int(num_cores)
    P = 1 << m
    if P // num_cores < LANES:
        num_cores = 1
    per_core = P // num_cores
    if tile_p is None:
        tile_p = 32768                                          # small VMEM footprint after hoist
    tile_p = int(min(tile_p, per_core))
    assert tile_p >= LANES and (tile_p & (tile_p - 1)) == 0
    assert per_core % tile_p == 0
    tiles_per_core = per_core // tile_p
    num_tiles = num_cores * tiles_per_core
    tp_s = tile_p // LANES
    logtp = tile_p.bit_length() - 1

    K = n + 1                                                   # n constraint rows + 1 cost row
    K8 = ((K + 7) // 8) * 8

    hp = jax.lax.Precision.HIGHEST
    A_aug = jnp.concatenate([A, c_row], axis=0)                 # (K, m): rows = A, last row = c
    b_aug = jnp.concatenate([b_vec, jnp.zeros((1,), jnp.float32)])  # (K,)

    # Tile-invariant low-bit table: lowtab[k, r] = sum_{j<logtp} A_aug[k,j]*bit_j(r) + b_aug[k]
    r = jnp.arange(tile_p, dtype=jnp.int32)
    jlow = jnp.arange(logtp, dtype=jnp.int32)
    bits_low = ((r[None, :] >> jlow[:, None]) & 1).astype(jnp.float32)      # (logtp, tile_p)
    lowtab = jnp.dot(A_aug[:, :logtp], bits_low, precision=hp) + b_aug[:, None]
    lowtab = lowtab.reshape(K, tp_s, LANES)                     # candidate r -> (r//128, r%128)

    # Per-tile high-bit contribution: high[tg, k] = sum_{j>=logtp} A_aug[k,j]*bit_j(tg*tile_p)
    nhigh = m - logtp
    if nhigh > 0:
        tg = jnp.arange(num_tiles, dtype=jnp.int32)
        jh = jnp.arange(nhigh, dtype=jnp.int32)
        bits_high = ((tg[:, None] >> jh[None, :]) & 1).astype(jnp.float32)  # (num_tiles, nhigh)
        hvals = jnp.dot(bits_high, A_aug[:, logtp:m].T, precision=hp)       # (num_tiles, K)
    else:
        hvals = jnp.zeros((num_tiles, K), jnp.float32)
    high_tab = jnp.zeros((num_tiles, K8, LANES), jnp.float32)
    high_tab = high_tab.at[:, :K, :].set(
        jnp.broadcast_to(hvals[:, :, None], (num_tiles, K, LANES)))

    # Tile-local candidate index (tile-invariant, loaded once).
    idx_tab = (jnp.arange(tp_s, dtype=jnp.int32)[:, None] * LANES
               + jnp.arange(LANES, dtype=jnp.int32)[None, :])

    kernel = functools.partial(_ilp_scan_kernel, n=n, tile_p=tile_p,
                               tiles_per_core=tiles_per_core)

    sol_pad, raw_cost = pl.pallas_call(
        kernel,
        out_shape=(
            jax.ShapeDtypeStruct((num_cores, 1, LANES), jnp.float32),
            jax.ShapeDtypeStruct((num_cores, 1, 1), jnp.float32),
        ),
        grid_spec=pltpu.PrefetchScalarGridSpec(
            num_scalar_prefetch=0,
            grid=(num_cores, tiles_per_core),
            in_specs=[
                pl.BlockSpec((K, tp_s, LANES), lambda cc, t: (0, 0, 0)),     # resident
                pl.BlockSpec((None, K8, LANES),
                             lambda cc, t: (cc * tiles_per_core + t, 0, 0)),  # 4 KiB/step
                pl.BlockSpec((tp_s, LANES), lambda cc, t: (0, 0)),            # resident
            ],
            out_specs=[
                pl.BlockSpec((None, 1, LANES), lambda cc, t: (cc, 0, 0)),
                pl.BlockSpec((None, 1, 1), lambda cc, t: (cc, 0, 0)),
            ],
            scratch_shapes=[
                pltpu.VMEM((1, 1), jnp.float32),   # running best (masked) cost
                pltpu.VMEM((1, 1), jnp.int32),     # running best candidate index
            ],
        ),
        compiler_params=pltpu.CompilerParams(
            dimension_semantics=("parallel", "arbitrary"),
            vmem_limit_bytes=32 * 1024 * 1024,     # few-MiB footprint; safe on 64 MiB v7x too
        ),
    )(lowtab, high_tab, idx_tab)

    # Cross-shard reduction (tiny, host/XLA side). Shards cover contiguous ascending index
    # ranges, so argmin's first-index tie-break matches global first-index argmin.
    raw = raw_cost[:, 0, 0]                        # (num_cores,), inf if shard infeasible
    pick = jnp.argmin(raw)
    solution = sol_pad[pick, 0, :m].reshape(1, m)  # (1, m); all-zeros if fully infeasible

    if target == "opt":
        return solution
    elif target == "cost":
        return jnp.sum(solution * c_row)           # mirrors solution.mul(c).sum()
    elif target == "sum":
        return jnp.sum(solution)
    else:
        raise ValueError("Unknown objective function")


def _reference_forward(A, b, c, target="cost"):
    """Pure numpy reference of the same exact ILP semantics."""
    A = np.asarray(A, np.float64)
    b = np.asarray(b, np.float64).reshape(-1, 1)
    c = np.asarray(c, np.float64).reshape(1, -1)
    n, m = A.shape
    cons1 = np.hstack([A, b])
    cons = np.vstack([cons1, -cons1])
    P = 1 << m
    idx = np.arange(P)
    X = ((idx[:, None] >> np.arange(m)[None, :]) & 1).astype(np.float64)
    feas = np.all(X @ cons[:, :m].T + cons[:, m][None, :] <= 1e-6, axis=1)
    costs = np.where(feas, X @ c.reshape(-1), np.inf)
    best = int(np.argmin(costs))
    sol = X[best:best + 1]
    if target == "opt":
        return sol
    if target == "cost":
        return float((sol * c).sum())
    if target == "sum":
        return float(sol.sum())
    raise ValueError


if __name__ == "__main__":
    # Small directed graph: n = 4 nodes, m = 12 edges (all ordered pairs).
    n_nodes = 4
    edges = [(i, j) for i in range(n_nodes) for j in range(n_nodes) if i != j]
    m_edges = len(edges)                                          # 12 -> 2^12 = 4096 candidates

    # Incidence matrix A: A[i, e] = -1 if edge e leaves node i, +1 if it enters node i.
    A_np = np.zeros((n_nodes, m_edges), np.float32)
    for e, (i, j) in enumerate(edges):
        A_np[i, e] = -1.0
        A_np[j, e] = +1.0

    # b: +1 at the source, -1 at the target (constraints enforce unit s->t flow).
    source, targetn = 0, 3
    b_np = np.zeros((n_nodes, 1), np.float32)
    b_np[source, 0] = 1.0
    b_np[targetn, 0] = -1.0

    # Positive edge weights, deterministic.
    key = jax.random.PRNGKey(0)
    c_np = np.asarray(jax.random.uniform(key, (m_edges,), jnp.float32,
                                         minval=0.1, maxval=1.0))

    A_j = jnp.asarray(A_np)
    b_j = jnp.asarray(b_np)
    c_j = jnp.asarray(c_np)

    cost = shortest_path_forward(A_j, b_j, c_j, target="cost")
    cost = jax.block_until_ready(cost)

    sol = shortest_path_forward(A_j, b_j, c_j, target="opt")
    sol = jax.block_until_ready(sol)

    ref_cost = _reference_forward(A_np, b_np, c_np, target="cost")
    ref_sol = _reference_forward(A_np, b_np, c_np, target="opt")

    assert np.allclose(np.asarray(cost), ref_cost, rtol=1e-5, atol=1e-5), (cost, ref_cost)
    assert np.allclose(np.asarray(sol), ref_sol), (sol, ref_sol)

    print("KERNEL_OK")
</pallas_src>

<mosaic_0001>
module attributes {stable_mosaic.version = 11 : i64} {
  func.func @_ilp_scan_kernel(%arg0: i32, %arg1: i32, %arg2: memref<5x32x128xf32, #tpu.memory_space<vmem>>, %arg3: memref<1x8x128xf32, #tpu.memory_space<vmem>>, %arg4: memref<32x128xi32, #tpu.memory_space<vmem>>, %arg5: memref<1x1x128xf32, #tpu.memory_space<vmem>>, %arg6: memref<1x1x1xf32, #tpu.memory_space<vmem>>, %arg7: memref<1x1xf32, #tpu.memory_space<vmem>>, %arg8: memref<1x1xi32, #tpu.memory_space<vmem>>) attributes {dimension_semantics = [#tpu.dimension_semantics<parallel>, #tpu.dimension_semantics<arbitrary>], iteration_bounds = array<i64: 1, 1>, scalar_prefetch = 0 : i64, scratch_operands = 2 : i64, tpu.core_type = #tpu.core_type<tc>, window_params = [{pipeline_mode = #tpu.pipeline_mode<synchronous>, transform_indices = @transform_0, window_bounds = array<i64: 5, 32, 128>}, {transform_indices = @transform_1, window_bounds = array<i64: 1, 8, 128>}, {pipeline_mode = #tpu.pipeline_mode<synchronous>, transform_indices = @transform_2, window_bounds = array<i64: 32, 128>}, {transform_indices = @transform_3, window_bounds = array<i64: 1, 1, 128>}, {transform_indices = @transform_4, window_bounds = array<i64: 1, 1, 1>}]} {
    %c0_i32 = arith.constant 0 : i32
    %0 = arith.cmpi eq, %arg1, %c0_i32 : i32
    %1 = arith.extui %0 : i1 to i32
    %c0_i32_0 = arith.constant 0 : i32
    %2 = arith.cmpi ne, %1, %c0_i32_0 : i32
    scf.if %2 {
      %cst_44 = arith.constant 0x7F800000 : f32
      %75 = vector.broadcast %cst_44 : f32 to vector<1x1xf32>
      %c0_45 = arith.constant 0 : index
      %c0_46 = arith.constant 0 : index
      %76 = vector.load %arg7[%c0_45, %c0_46] : memref<1x1xf32, #tpu.memory_space<vmem>>, vector<1x1xf32>
      tpu.vector_store %arg7[%c0_45, %c0_46], %75 {strides = array<i32>} : memref<1x1xf32, #tpu.memory_space<vmem>>, vector<1x1xf32>,
      %c0_i32_47 = arith.constant 0 : i32
      %77 = vector.broadcast %c0_i32_47 : i32 to vector<1x1xi32>
      %c0_48 = arith.constant 0 : index
      %c0_49 = arith.constant 0 : index
      %78 = vector.load %arg8[%c0_48, %c0_49] : memref<1x1xi32, #tpu.memory_space<vmem>>, vector<1x1xi32>
      tpu.vector_store %arg8[%c0_48, %c0_49], %77 {strides = array<i32>} : memref<1x1xi32, #tpu.memory_space<vmem>>, vector<1x1xi32>,
    } else {
    }
    %c0 = arith.constant 0 : index
    %c0_1 = arith.constant 0 : index
    %c0_2 = arith.constant 0 : index
    %3 = vector.load %arg2[%c0, %c0_1, %c0_2] : memref<5x32x128xf32, #tpu.memory_space<vmem>>, vector<1x32x128xf32>
    %4 = vector.shape_cast %3 : vector<1x32x128xf32> to vector<32x128xf32>
    %c0_3 = arith.constant 0 : index
    %c0_4 = arith.constant 0 : index
    %c0_5 = arith.constant 0 : index
    %5 = vector.load %arg3[%c0_3, %c0_4, %c0_5] : memref<1x8x128xf32, #tpu.memory_space<vmem>>, vector<1x1x128xf32>
    %6 = vector.shape_cast %5 : vector<1x1x128xf32> to vector<1x128xf32>
    %7 = vector.broadcast %6 : vector<1x128xf32> to vector<32x128xf32>
    %8 = arith.addf %4, %7 : vector<32x128xf32>
    %9 = math.absf %8 : vector<32x128xf32>
    %c1 = arith.constant 1 : index
    %c0_6 = arith.constant 0 : index
    %c0_7 = arith.constant 0 : index
    %10 = vector.load %arg2[%c1, %c0_6, %c0_7] : memref<5x32x128xf32, #tpu.memory_space<vmem>>, vector<1x32x128xf32>
    %11 = vector.shape_cast %10 : vector<1x32x128xf32> to vector<32x128xf32>
    %c0_8 = arith.constant 0 : index
    %c1_9 = arith.constant 1 : index
    %c0_10 = arith.constant 0 : index
    %12 = vector.load %arg3[%c0_8, %c1_9, %c0_10] : memref<1x8x128xf32, #tpu.memory_space<vmem>>, vector<1x1x128xf32>
    %13 = vector.shape_cast %12 : vector<1x1x128xf32> to vector<1x128xf32>
    %14 = vector.broadcast %13 : vector<1x128xf32> to vector<32x128xf32>
    %15 = arith.addf %11, %14 : vector<32x128xf32>
    %16 = math.absf %15 : vector<32x128xf32>
    %17 = arith.addf %9, %16 : vector<32x128xf32>
    %c2 = arith.constant 2 : index
    %c0_11 = arith.constant 0 : index
    %c0_12 = arith.constant 0 : index
    %18 = vector.load %arg2[%c2, %c0_11, %c0_12] : memref<5x32x128xf32, #tpu.memory_space<vmem>>, vector<1x32x128xf32>
    %19 = vector.shape_cast %18 : vector<1x32x128xf32> to vector<32x128xf32>
    %c0_13 = arith.constant 0 : index
    %c2_14 = arith.constant 2 : index
    %c0_15 = arith.constant 0 : index
    %20 = vector.load %arg3[%c0_13, %c2_14, %c0_15] : memref<1x8x128xf32, #tpu.memory_space<vmem>>, vector<1x1x128xf32>
    %21 = vector.shape_cast %20 : vector<1x1x128xf32> to vector<1x128xf32>
    %22 = vector.broadcast %21 : vector<1x128xf32> to vector<32x128xf32>
    %23 = arith.addf %19, %22 : vector<32x128xf32>
    %24 = math.absf %23 : vector<32x128xf32>
    %25 = arith.addf %17, %24 : vector<32x128xf32>
    %c3 = arith.constant 3 : index
    %c0_16 = arith.constant 0 : index
    %c0_17 = arith.constant 0 : index
    %26 = vector.load %arg2[%c3, %c0_16, %c0_17] : memref<5x32x128xf32, #tpu.memory_space<vmem>>, vector<1x32x128xf32>
    %27 = vector.shape_cast %26 : vector<1x32x128xf32> to vector<32x128xf32>
    %c0_18 = arith.constant 0 : index
    %c3_19 = arith.constant 3 : index
    %c0_20 = arith.constant 0 : index
    %28 = vector.load %arg3[%c0_18, %c3_19, %c0_20] : memref<1x8x128xf32, #tpu.memory_space<vmem>>, vector<1x1x128xf32>
    %29 = vector.shape_cast %28 : vector<1x1x128xf32> to vector<1x128xf32>
    %30 = vector.broadcast %29 : vector<1x128xf32> to vector<32x128xf32>
    %31 = arith.addf %27, %30 : vector<32x128xf32>
    %32 = math.absf %31 : vector<32x128xf32>
    %33 = arith.addf %25, %32 : vector<32x128xf32>
    %c4 = arith.constant 4 : index
    %c0_21 = arith.constant 0 : index
    %c0_22 = arith.constant 0 : index
    %34 = vector.load %arg2[%c4, %c0_21, %c0_22] : memref<5x32x128xf32, #tpu.memory_space<vmem>>, vector<1x32x128xf32>
    %35 = vector.shape_cast %34 : vector<1x32x128xf32> to vector<32x128xf32>
    %c0_23 = arith.constant 0 : index
    %c4_24 = arith.constant 4 : index
    %c0_25 = arith.constant 0 : index
    %36 = vector.load %arg3[%c0_23, %c4_24, %c0_25] : memref<1x8x128xf32, #tpu.memory_space<vmem>>, vector<1x1x128xf32>
    %37 = vector.shape_cast %36 : vector<1x1x128xf32> to vector<1x128xf32>
    %38 = vector.broadcast %37 : vector<1x128xf32> to vector<32x128xf32>
    %39 = arith.addf %35, %38 : vector<32x128xf32>
    %cst = arith.constant 9.99999974E-5 : f32
    %40 = vector.broadcast %cst : f32 to vector<32x128xf32>
    %41 = arith.cmpf ole, %33, %40 : vector<32x128xf32>
    %cst_26 = arith.constant 0x7F800000 : f32
    %42 = vector.broadcast %cst_26 : f32 to vector<32x128xf32>
    %43 = arith.select %41, %39, %42 : vector<32x128xi1>, vector<32x128xf32>
    %44 = vector.shape_cast %43 : vector<32x128xf32> to vector<1x32x128xf32>
    %cst_27 = arith.constant dense<0x7F800000> : vector<1xf32>
    %45 = vector.multi_reduction <minimumf>, %44, %cst_27 [1, 2] : vector<1x32x128xf32> to vector<1xf32>
    %46 = vector.shape_cast %45 : vector<1xf32> to vector<1x1x1xf32>
    %47 = vector.extract %46[0, 0, 0] : f32 from vector<1x1x1xf32>
    %48 = vector.broadcast %47 : f32 to vector<32x128xf32>
    %49 = arith.cmpf oeq, %43, %48 : vector<32x128xf32>
    %c0_28 = arith.constant 0 : index
    %c0_29 = arith.constant 0 : index
    %50 = vector.load %arg4[%c0_28, %c0_29] : memref<32x128xi32, #tpu.memory_space<vmem>>, vector<32x128xi32>
    %c4096_i32 = arith.constant 4096 : i32
    %51 = vector.broadcast %c4096_i32 : i32 to vector<32x128xi32>
    %52 = arith.select %49, %50, %51 : vector<32x128xi1>, vector<32x128xi32>
    %53 = vector.shape_cast %52 : vector<32x128xi32> to vector<1x32x128xi32>
    %cst_30 = arith.constant dense<2147483647> : vector<1xi32>
    %54 = vector.multi_reduction <minsi>, %53, %cst_30 [1, 2] : vector<1x32x128xi32> to vector<1xi32>
    %55 = vector.shape_cast %54 : vector<1xi32> to vector<1x1x1xi32>
    %56 = vector.extract %55[0, 0, 0] : i32 from vector<1x1x1xi32>
    %c1_i32 = arith.constant 1 : i32
    %57 = arith.muli %arg0, %c1_i32 : i32
    %58 = arith.addi %57, %arg1 : i32
    %c4096_i32_31 = arith.constant 4096 : i32
    %59 = arith.muli %58, %c4096_i32_31 : i32
    %c0_32 = arith.constant 0 : index
    %c0_33 = arith.constant 0 : index
    %60 = vector.load %arg7[%c0_32, %c0_33] : memref<1x1xf32, #tpu.memory_space<vmem>>, vector<1x1xf32>
    %61 = vector.broadcast %47 : f32 to vector<1x1xf32>
    %62 = arith.cmpf olt, %61, %60 : vector<1x1xf32>
    %c0_34 = arith.constant 0 : index
    %c0_35 = arith.constant 0 : index
    %63 = vector.load %arg7[%c0_34, %c0_35] : memref<1x1xf32, #tpu.memory_space<vmem>>, vector<1x1xf32>
    %64 = vector.broadcast %47 : f32 to vector<1x1xf32>
    %65 = arith.select %62, %64, %63 : vector<1x1xi1>, vector<1x1xf32>
    %c0_36 = arith.constant 0 : index
    %c0_37 = arith.constant 0 : index
    %66 = vector.load %arg7[%c0_36, %c0_37] : memref<1x1xf32, #tpu.memory_space<vmem>>, vector<1x1xf32>
    tpu.vector_store %arg7[%c0_36, %c0_37], %65 {strides = array<i32>} : memref<1x1xf32, #tpu.memory_space<vmem>>, vector<1x1xf32>,
    %67 = arith.addi %59, %56 : i32
    %c0_38 = arith.constant 0 : index
    %c0_39 = arith.constant 0 : index
    %68 = vector.load %arg8[%c0_38, %c0_39] : memref<1x1xi32, #tpu.memory_space<vmem>>, vector<1x1xi32>
    %69 = vector.broadcast %67 : i32 to vector<1x1xi32>
    %70 = arith.select %62, %69, %68 : vector<1x1xi1>, vector<1x1xi32>
    %c0_40 = arith.constant 0 : index
    %c0_41 = arith.constant 0 : index
    %71 = vector.load %arg8[%c0_40, %c0_41] : memref<1x1xi32, #tpu.memory_space<vmem>>, vector<1x1xi32>
    tpu.vector_store %arg8[%c0_40, %c0_41], %70 {strides = array<i32>} : memref<1x1xi32, #tpu.memory_space<vmem>>, vector<1x1xi32>,
    %c0_i32_42 = arith.constant 0 : i32
    %72 = arith.cmpi eq, %arg1, %c0_i32_42 : i32
    %73 = arith.extui %72 : i1 to i32
    %c0_i32_43 = arith.constant 0 : i32
    %74 = arith.cmpi ne, %73, %c0_i32_43 : i32
    scf.if %74 {
      %c0_44 = arith.constant 0 : index
      %c0_45 = arith.constant 0 : index
      %75 = vector.load %arg8[%c0_44, %c0_45] : memref<1x1xi32, #tpu.memory_space<vmem>>, vector<1x1xi32>
      %76 = tpu.iota {dimensions = array<i32: 1>} : vector<1x128xi32>
      %c31_i32 = arith.constant 31 : i32
      %77 = vector.broadcast %c31_i32 : i32 to vector<1x128xi32>
      %78 = arith.minsi %76, %77 : vector<1x128xi32>
      %79 = vector.broadcast %75 : vector<1x1xi32> to vector<1x128xi32>
      %80 = arith.shrsi %79, %78 : vector<1x128xi32>
      %c1_i32_46 = arith.constant 1 : i32
      %81 = vector.broadcast %c1_i32_46 : i32 to vector<1x128xi32>
      %82 = arith.andi %80, %81 : vector<1x128xi32>
      %83 = arith.sitofp %82 : vector<1x128xi32> to vector<1x128xf32>
      %c0_47 = arith.constant 0 : index
      %c0_48 = arith.constant 0 : index
      %c0_49 = arith.constant 0 : index
      %84 = vector.load %arg5[%c0_47, %c0_48, %c0_49] : memref<1x1x128xf32, #tpu.memory_space<vmem>>, vector<1x1x128xf32>
      %85 = vector.shape_cast %84 : vector<1x1x128xf32> to vector<1x128xf32>
      %86 = vector.shape_cast %83 : vector<1x128xf32> to vector<1x1x128xf32>
      tpu.vector_store %arg5[%c0_47, %c0_48, %c0_49], %86 {strides = array<i32>} : memref<1x1x128xf32, #tpu.memory_space<vmem>>, vector<1x1x128xf32>,
      %c0_50 = arith.constant 0 : index
      %c0_51 = arith.constant 0 : index
      %87 = vector.load %arg7[%c0_50, %c0_51] : memref<1x1xf32, #tpu.memory_space<vmem>>, vector<1x1xf32>
      %c0_52 = arith.constant 0 : index
      %c0_53 = arith.constant 0 : index
      %c0_54 = arith.constant 0 : index
      %88 = vector.load %arg6[%c0_52, %c0_53, %c0_54] : memref<1x1x1xf32, #tpu.memory_space<vmem>>, vector<1x1x1xf32>
      %89 = vector.shape_cast %88 : vector<1x1x1xf32> to vector<1x1xf32>
      %90 = vector.shape_cast %87 : vector<1x1xf32> to vector<1x1x1xf32>
      tpu.vector_store %arg6[%c0_52, %c0_53, %c0_54], %90 {strides = array<i32>} : memref<1x1x1xf32, #tpu.memory_space<vmem>>, vector<1x1x1xf32>,
    } else {
    }
    return
  }
  func.func @transform_0(%arg0: i32, %arg1: i32) -> (i32, i32, i32) {
    %c0_i32 = arith.constant 0 : i32
    %c0_i32_0 = arith.constant 0 : i32
    %c0_i32_1 = arith.constant 0 : i32
    %c0_i32_2 = arith.constant 0 : i32
    return %c0_i32, %c0_i32_0, %c0_i32_1 : i32, i32, i32
  }
  func.func @transform_1(%arg0: i32, %arg1: i32) -> (i32, i32, i32) {
    %c1_i32 = arith.constant 1 : i32
    %0 = arith.muli %arg0, %c1_i32 : i32
    %1 = arith.addi %0, %arg1 : i32
    %c0_i32 = arith.constant 0 : i32
    %c0_i32_0 = arith.constant 0 : i32
    %c0_i32_1 = arith.constant 0 : i32
    return %1, %c0_i32, %c0_i32_0 : i32, i32, i32
  }
  func.func @transform_2(%arg0: i32, %arg1: i32) -> (i32, i32) {
    %c0_i32 = arith.constant 0 : i32
    %c0_i32_0 = arith.constant 0 : i32
    %c0_i32_1 = arith.constant 0 : i32
    return %c0_i32, %c0_i32_0 : i32, i32
  }
  func.func @transform_3(%arg0: i32, %arg1: i32) -> (i32, i32, i32) {
    %c0_i32 = arith.constant 0 : i32
    %c0_i32_0 = arith.constant 0 : i32
    %c0_i32_1 = arith.constant 0 : i32
    return %arg0, %c0_i32, %c0_i32_0 : i32, i32, i32
  }
  func.func @transform_4(%arg0: i32, %arg1: i32) -> (i32, i32, i32) {
    %c0_i32 = arith.constant 0 : i32
    %c0_i32_0 = arith.constant 0 : i32
    %c0_i32_1 = arith.constant 0 : i32
    return %arg0, %c0_i32, %c0_i32_0 : i32, i32, i32
  }
}

</mosaic_0001>

<bundles_post_ra>
// kernel: tpu_custom_call.1
= control target key start
LH: loop header
LB: loop body
LE: loop exit
PB: predicated region body
PF: predicated region fallthrough
CT: control target
= control target key end

     0   :  { %10 = vsyncpa [#allocation5], 0  ;;  %s537_s0 = inlined_call_operand.hbm [shape: f32[5,32,128], index: 0, kind: input, shape index: {}]   ;;  %s538_s1 = inlined_call_operand.hbm [shape: f32[1,8,128], index: 1, kind: input, shape index: {}]   ;;  %s539_s2 = inlined_call_operand.hbm [shape: s32[32,128], index: 2, kind: input, shape index: {}]   ;;  %s540_s3 = inlined_call_operand.hbm [shape: f32[1,1,128], index: 3, kind: output, shape index: {0}]   ;;  %s541_s4 = inlined_call_operand.hbm [shape: f32[1,1,1], index: 4, kind: output, shape index: {1}]  }
   0x1   :  { %11 = vsyncpa [#allocation8], 0 }
   0x2   :  { %12 = vsyncpa [#allocation6], 0 }
   0x3   :  { %13 = vsyncpa [#allocation12], 0  ;;  %s429_s15 = smov [#allocation7]   ;;  %s430_s17 = smov [#allocation4]  }
   0x4   :  { %s35_s16 = sshll.u32 %s429_s15, 4  ;;  %s19_s18 = sshll.u32 %s430_s17, 4  ;;  %s36_s16 = int_to_ptr.vmem [resolvable:$true] %s35_s16  ;;  %s463_s18 = int_to_ptr.vmem [resolvable:$true] %s19_s18 }
   0x5   :  { %s311_s21 = scalar_lea.hbm %s538_s1, 128 }
   0x6   :  { %p312_p0 = scmp.ne.s32.totalorder %s538_s1, %s311_s21  ;;  %p315_p1 = scmp.lt.u32.totalorder %s311_s21, %s538_s1 }
   0x8   :  { %p317_p2 = pnand %p315_p1, %p312_p0 }
   0xa   :  { %320 = shalt.err (!%p317_p2)
}
   0xb   :  { %s321_s26 = scalar_lea.vmem %s36_s16, 128  ;;  %p326_p4 = scmp.lt.s32.totalorder %s36_s16, %s36_s16 }
   0xc   :  { %p322_p3 = scmp.ne.s32.totalorder %s36_s16, %s321_s26  ;;  %p327_p5 = scmp.lt.s32.totalorder %s321_s26, %s321_s26 }
   0xe   :  { %p328_p6 = por %p327_p5, %p326_p4 }
  0x10   :  { %p329_p7 = pnand %p328_p6, %p322_p3 }
  0x12   :  { %332 = shalt.err (!%p329_p7)
}
  0x13   :  { %38 = dma.hbm_to_vmem [thread:$0]  %s538_s1, 128, %s36_s16, [#allocation8]  }
  0x14   :  { %s333_s5 = scalar_lea.hbm %s537_s0, 2560 }
  0x15   :  { %p334_p8 = scmp.ne.s32.totalorder %s537_s0, %s333_s5  ;;  %p337_p9 = scmp.lt.u32.totalorder %s333_s5, %s537_s0 }
  0x17   :  { %p339_p10 = pnand %p337_p9, %p334_p8 }
  0x19   :  { %342 = shalt.err (!%p339_p10)
}
  0x1a   :  { %s343_s10 = scalar_lea.vmem %s463_s18, 2560  ;;  %p348_p12 = scmp.lt.s32.totalorder %s463_s18, %s463_s18 }
  0x1b   :  { %p344_p11 = scmp.ne.s32.totalorder %s463_s18, %s343_s10  ;;  %p349_p13 = scmp.lt.s32.totalorder %s343_s10, %s343_s10 }
  0x1d   :  { %p350_p0 = por %p349_p13, %p348_p12 }
  0x1f   :  { %p351_p1 = pnand %p350_p0, %p344_p11 }
  0x21   :  { %354 = shalt.err (!%p351_p1)
}
  0x22   :  { %s431_s1 = smov 128   ;;  %s432_s11 = smov 8  }
  0x23   :  { %25 = dma.hbm_to_vmem [thread:$0]  %s537_s0, 2560, %s463_s18, [#allocation5], %s431_s1, %s431_s1, %s432_s11  }
  0x24   :  { %s433_s14 = smov [#allocation9]   ;;  %s355_s19 = scalar_lea.hbm %s539_s2, 512 }
  0x25   :  { %s44_s15 = sshll.u32 %s433_s14, 4  ;;  %p356_p2 = scmp.ne.s32.totalorder %s539_s2, %s355_s19  ;;  %s45_s15 = int_to_ptr.vmem [resolvable:$true] %s44_s15 }
  0x26   :  { %p359_p3 = scmp.lt.u32.totalorder %s355_s19, %s539_s2 }
  0x28   :  { %p361_p4 = pnand %p359_p3, %p356_p2 }
  0x2a   :  { %364 = shalt.err (!%p361_p4)
}
  0x2b   :  { %s365_s24 = scalar_lea.vmem %s45_s15, 512  ;;  %p370_p6 = scmp.lt.s32.totalorder %s45_s15, %s45_s15 }
  0x2c   :  { %p366_p5 = scmp.ne.s32.totalorder %s45_s15, %s365_s24  ;;  %p371_p7 = scmp.lt.s32.totalorder %s365_s24, %s365_s24 }
  0x2e   :  { %p372_p8 = por %p371_p7, %p370_p6 }
  0x30   :  { %p373_p9 = pnand %p372_p8, %p366_p5 }
  0x32   :  { %376 = shalt.err (!%p373_p9)
}
  0x33   :  { %50 = dma.hbm_to_vmem [thread:$0]  %s539_s2, 512, %s45_s15, [#allocation8], %s431_s1, %s431_s1, %s432_s11  }
  0x34   :  { %421 = dma.done.wait [#allocation5], 2560  }
  0x35   :  { %422 = vsyncadd [#allocation5], 4294964736 }
  0x36   :  { %423 = dma.done.wait [#allocation8], 640  }
  0x37   :  { %424 = vsyncadd [#allocation8], 4294966656  ;;  %v68_v0 = vld [vmem:[#allocation4] sm:$0xff]  ;;  %v69_v1 = vld [vmem:[#allocation4 + $0x8] sm:$0xff]  ;;  %vm65_vm4 = vcmask 0   ;;  %s436_s26 = smov [#allocation11]  }
  0x38   :  { %v70_v2 = vld [vmem:[#allocation4 + $0x10] sm:$0xff]  ;;  %v71_v3 = vld [vmem:[#allocation4 + $0x18] sm:$0xff]  ;;  %v291_v4 = vld [vmem:[#allocation7] ss:$0 sm:$0xff]  ;;  %s277_s27 = sshll.u32 %s436_s26, 4  ;;  %s278_s27 = int_to_ptr.vmem [resolvable:$true] %s277_s27 }
  0x39   :  { %v86_v5 = vld [vmem:[#allocation4 + $0x20] sm:$0xff]  ;;  %v77_v6 = vadd.f32 %v291_v4, %v68_v0  ;;  %v78_v7 = vadd.f32 %v291_v4, %v69_v1  ;;  %v79_v8 = vadd.f32 %v291_v4, %v70_v2  ;;  %v80_v9 = vadd.f32 %v291_v4, %v71_v3  ;;  %v87_v10 = vld [vmem:[#allocation4 + $0x28] sm:$0xff]  ;;  %v88_v11 = vld [vmem:[#allocation4 + $0x30] sm:$0xff]  ;;  %s377_s28 = scalar_lea.vmem %s278_s27, 16  ;;  %s381_s29 = scalar_lea.vmem %s278_s27, 32 }
  0x3a   :  { %v89_v12 = vld [vmem:[#allocation4 + $0x38] sm:$0xff]  ;;  %v292_v13 = vld [vmem:[#allocation7 + $0x1] ss:$0 sm:$0xff]  ;;  %v109_v15 = vld [vmem:[#allocation4 + $0x48] sm:$0xff]  ;;  %p378_p10 = scmp.ne.s32.totalorder %s278_s27, %s377_s28  ;;  %p382_p11 = scmp.lt.s32.totalorder %s278_s27, %s278_s27 }
  0x3b   :  { %v108_v14 = vld [vmem:[#allocation4 + $0x40] sm:$0xff]  ;;  %v81_v16 = vand.u32 2147483647, %v77_v6  ;;  %v82_v17 = vand.u32 2147483647, %v78_v7  ;;  %v95_v19 = vadd.f32 %v292_v13, %v86_v5  ;;  %v96_v21 = vadd.f32 %v292_v13, %v87_v10  ;;  %v110_v24 = vld [vmem:[#allocation4 + $0x50] sm:$0xff]  ;;  %p383_p12 = scmp.lt.s32.totalorder %s381_s29, %s377_s28 }
  0x3c   :  { %v83_v18 = vand.u32 2147483647, %v79_v8  ;;  %v84_v20 = vand.u32 2147483647, %v80_v9  ;;  %v97_v22 = vadd.f32 %v292_v13, %v88_v11  ;;  %v98_v23 = vadd.f32 %v292_v13, %v89_v12  ;;  %v111_v25 = vld [vmem:[#allocation4 + $0x58] sm:$0xff]  ;;  %v130_v31 = vld [vmem:[#allocation4 + $0x60] sm:$0xff] }
  0x3d   :  { %v293_v26 = vld [vmem:[#allocation7 + $0x2] ss:$0 sm:$0xff]  ;;  %v99_v27 = vand.u32 2147483647, %v95_v19  ;;  %v131_v32 = vld [vmem:[#allocation4 + $0x68] sm:$0xff]  ;;  %v132_v33 = vld [vmem:[#allocation4 + $0x70] sm:$0xff]  ;;  %p384_p13 = por %p383_p12, %p382_p11 }
  0x3e   :  { %v117_v28 = vadd.f32 %v293_v26, %v108_v14  ;;  %v118_v29 = vadd.f32 %v293_v26, %v109_v15  ;;  %v119_v30 = vadd.f32 %v293_v26, %v110_v24  ;;  %v100_v34 = vand.u32 2147483647, %v96_v21  ;;  %v133_v46 = vld [vmem:[#allocation4 + $0x78] sm:$0xff]  ;;  %v294_v47 = vld [vmem:[#allocation7 + $0x3] ss:$0 sm:$0xff]  ;;  %v153_v53 = vld [vmem:[#allocation4 + $0x88] sm:$0xff] }
  0x3f   :  { %v101_v35 = vand.u32 2147483647, %v97_v22  ;;  %v102_v36 = vand.u32 2147483647, %v98_v23  ;;  %v120_v37 = vadd.f32 %v293_v26, %v111_v25  ;;  %v103_v38 = vadd.f32 %v99_v27, %v81_v16  ;;  %v152_v52 = vld [vmem:[#allocation4 + $0x80] sm:$0xff]  ;;  %v154_v54 = vld [vmem:[#allocation4 + $0x90] sm:$0xff]  ;;  %p385_p0 = pnand %p384_p13, %p378_p10 }
  0x40   :  { %v121_v39 = vand.u32 2147483647, %v117_v28  ;;  %v122_v40 = vand.u32 2147483647, %v118_v29  ;;  %v123_v41 = vand.u32 2147483647, %v119_v30  ;;  %v104_v42 = vadd.f32 %v100_v34, %v82_v17 }
  0x41   :  { %v105_v43 = vadd.f32 %v101_v35, %v83_v18  ;;  %v106_v44 = vadd.f32 %v102_v36, %v84_v20  ;;  %v124_v45 = vand.u32 2147483647, %v120_v37  ;;  %v139_v49 = vadd.f32 %v294_v47, %v130_v31  ;;  %v155_v59 = vld [vmem:[#allocation4 + $0x98] sm:$0xff]  ;;  %v295_v60 = vld [vmem:[#allocation7 + $0x4] ss:$0 sm:$0xff]  ;;  %v190_v25 = vld [vmem:[#allocation9] sm:$0xff] }
  0x42   :  { %v125_v48 = vadd.f32 %v121_v39, %v103_v38  ;;  %v140_v50 = vadd.f32 %v294_v47, %v131_v32  ;;  %v141_v51 = vadd.f32 %v294_v47, %v132_v33  ;;  %v126_v55 = vadd.f32 %v122_v40, %v104_v42  ;;  %v191_v26 = vld [vmem:[#allocation9 + $0x8] sm:$0xff]  ;;  %v192_v28 = vld [vmem:[#allocation9 + $0x10] sm:$0xff]  ;;  %v193_v29 = vld [vmem:[#allocation9 + $0x18] sm:$0xff] }
  0x43   :  { %v127_v56 = vadd.f32 %v123_v41, %v105_v43  ;;  %v128_v57 = vadd.f32 %v124_v45, %v106_v44  ;;  %v142_v58 = vadd.f32 %v294_v47, %v133_v46  ;;  %v143_v61 = vand.u32 2147483647, %v139_v49 }
  0x44   :  { %v144_v62 = vand.u32 2147483647, %v140_v50  ;;  %v145_v63 = vand.u32 2147483647, %v141_v51  ;;  %v161_v1 = vadd.f32 %v295_v60, %v152_v52  ;;  %v162_v2 = vadd.f32 %v295_v60, %v153_v53 }
  0x45   :  { %v146_v0 = vand.u32 2147483647, %v142_v58  ;;  %v163_v3 = vadd.f32 %v295_v60, %v154_v54  ;;  %v147_v4 = vadd.f32 %v143_v61, %v125_v48  ;;  %v164_v7 = vadd.f32 %v295_v60, %v155_v59 }
  0x46   :  { %v148_v5 = vadd.f32 %v144_v62, %v126_v55  ;;  %v149_v6 = vadd.f32 %v145_v63, %v127_v56  ;;  %v434_v16 = vmov inf   ;;  %v435_v45 = vmov 0  }
  0x47   :  { %v150_v8 = vadd.f32 %v146_v0, %v128_v57  ;;  %vm165_vm0 = vcmp.le.f32.partialorder %v147_v4, 0.0001  ;;  %66 = vst.msk [vmem:[#allocation2] sm:$0x1] %vm65_vm4, %v434_v16  ;;  %309 = vset.pattern.permute.xlu1 %v435_v45  ;;  %67 = vst.msk [vmem:[#allocation3] sm:$0x1] %vm65_vm4, %v435_v45  ;;  %310 = vset.pattern.permute.xlu0 %v435_v45 }
  0x48   :  { %vm166_vm1 = vcmp.le.f32.partialorder %v148_v5, 0.0001  ;;  %vm167_vm2 = vcmp.le.f32.partialorder %v149_v6, 0.0001  ;;  %v169_v9 = vsel %vm165_vm0, %v161_v1, inf }
  0x49   :  { %vm168_vm3 = vcmp.le.f32.partialorder %v150_v8, 0.0001  ;;  %v170_v10 = vsel %vm166_vm1, %v162_v2, inf  ;;  %v171_v11 = vsel %vm167_vm2, %v163_v3, inf }
  0x4a   :  { %v172_v12 = vsel %vm168_vm3, %v164_v7, inf  ;;  %v173_v13 = vmin.f32 %v169_v9, %v170_v10 }
  0x4b   :  { %v174_v14 = vmin.f32 %v171_v11, %v172_v12 }
  0x4d   :  { %v175_v15 = vmin.f32 %v173_v13, %v174_v14 }
  0x4e   :  { %v230_v24 = vld [vmem:[#allocation2] sm:$0x1]  ;;  %v236_v57 = vld [vmem:[#allocation3] sm:$0x1] }
  0x4f   :  { %176 = vmin.xlane.f32.xlu0 %v175_v15 }
  0xdc   :  { %v177_v17 = vpop.xlane.xlu0 %176 }
  0xdd   :  { %v178_v18 = vrot.slane %v177_v17, 4 }
  0xdf   :  { %v179_v19 = vmin.f32 %v177_v17, %v178_v18 }
  0xe1   :  { %v180_v20 = vrot.slane %v179_v19, 2 }
  0xe3   :  { %v181_v21 = vmin.f32 %v179_v19, %v180_v20 }
  0xe5   :  { %v182_v22 = vrot.slane %v181_v21, 1 }
  0xe7   :  { %v183_v23 = vmin.f32 %v181_v21, %v182_v22 }
  0xe9   :  { %296 = vpush %v183_v23 }
 0x11a   :  { %s297_s2 = spop %296 }
 0x11b   :  { %v185_v27 = vstv %s297_s2 }
 0x11c   :  { %vm231_vm5 = vcmp.lt.f32.partialorder %v185_v27, %v230_v24  ;;  %vm186_vm6 = vcmp.eq.f32.partialorder %v169_v9, %v185_v27  ;;  %vm187_vm7 = vcmp.eq.f32.partialorder %v170_v10, %v185_v27  ;;  %vm188_vm8 = vcmp.eq.f32.partialorder %v171_v11, %v185_v27 }
 0x11d   :  { %v232_v30 = vsel %vm231_vm5, %v185_v27, %v230_v24  ;;  %vm189_vm9 = vcmp.eq.f32.partialorder %v172_v12, %v185_v27  ;;  %v194_v31 = vsel %vm186_vm6, %v190_v25, 4096  ;;  %v195_v32 = vsel %vm187_vm7, %v191_v26, 4096 }
 0x11e   :  { %234 = vst.msk [vmem:[#allocation2] sm:$0x1] %vm65_vm4, %v232_v30  ;;  %v196_v33 = vsel %vm188_vm8, %v192_v28, 4096  ;;  %v197_v34 = vsel %vm189_vm9, %v193_v29, 4096  ;;  %vm198_vm10 = vcmp.lt.s32.totalorder %v194_v31, %v195_v32 }
 0x11f   :  { %v199_v35 = vsel %vm198_vm10, %v194_v31, %v195_v32  ;;  %vm200_vm11 = vcmp.lt.s32.totalorder %v196_v33, %v197_v34 }
 0x120   :  { %v201_v36 = vsel %vm200_vm11, %v196_v33, %v197_v34 }
 0x121   :  { %vm202_vm12 = vcmp.lt.s32.totalorder %v199_v35, %v201_v36 }
 0x122   :  { %v203_v37 = vsel %vm202_vm12, %v199_v35, %v201_v36 }
 0x123   :  { %v205_v38 = vshra.s32 %v203_v37, 16  ;;  %v204_v41 = vand.u32 65535, %v203_v37 }
 0x125   :  { %v207_v39 = vcvt.s32.f32 %v205_v38  ;;  %v259_v40 = vld [vmem:[#allocation2] sm:$0x1]  ;;  %v206_v43 = vcvt.s32.f32 %v204_v41 }
 0x126   :  { %260 = vst.msk [vmem:[#allocation11] sm:$0x1] %vm65_vm4, %v259_v40 }
 0x127   :  { %208 = vmin.xlane.f32.xlu0 %v207_v39 }
 0x1b4   :  { %v209_v42 = vpop.xlane.xlu0 %208 }
 0x1b5   :  { %vm210_vm13 = vcmp.eq.f32.partialorder %v207_v39, %v209_v42  ;;  %v215_v46 = vcvt.f32.s32 %v209_v42 }
 0x1b6   :  { %v211_v44 = vsel %vm210_vm13, %v206_v43, inf }
 0x1b7   :  { %212 = vmin.xlane.f32.xlu1 %v211_v44  ;;  %v216_v48 = vshll.u32 %v215_v46, 16 }
 0x244   :  { %v213_v47 = vpop.xlane.xlu1 %212 }
 0x245   :  { %v214_v49 = vcvt.f32.s32 %v213_v47 }
 0x247   :  { %v217_v50 = vadd.s32 %v216_v48, %v214_v49 }
 0x249   :  { %v218_v51 = vrot.slane %v217_v50, 4 }
 0x24b   :  { %vm219_vm14 = vcmp.lt.s32.totalorder %v217_v50, %v218_v51 }
 0x24c   :  { %v220_v52 = vsel %vm219_vm14, %v217_v50, %v218_v51 }
 0x24d   :  { %v221_v53 = vrot.slane %v220_v52, 2 }
 0x24f   :  { %vm222_vm15 = vcmp.lt.s32.totalorder %v220_v52, %v221_v53 }
 0x250   :  { %v223_v54 = vsel %vm222_vm15, %v220_v52, %v221_v53 }
 0x251   :  { %v224_v55 = vrot.slane %v223_v54, 1 }
 0x253   :  { %vm225_vm0 = vcmp.lt.s32.totalorder %v223_v54, %v224_v55 }
 0x254   :  { %v226_v56 = vsel %vm225_vm0, %v223_v54, %v224_v55 }
 0x255   :  { %298 = vpush %v226_v56 }
 0x286   :  { %s299_s25 = spop %298 }
 0x287   :  { %v237_v58 = vstv %s299_s25 }
 0x288   :  { %v238_v59 = vsel %vm231_vm5, %v237_v58, %v236_v57 }
 0x289   :  { %239 = vst.msk [vmem:[#allocation3] sm:$0x1] %vm65_vm4, %v238_v59 }
 0x290   :  { %v243_v60 = vld [vmem:[#allocation3] sm:$0x1] }
 0x291   :  { %249 = vperm.xlu1 %309, %v243_v60  }
 0x292   :  { %388 = shalt.err (!%p385_p0)
}
 0x293   :  { %s389_s6 = scalar_lea.hbm %s541_s4, 16 }
 0x294   :  { %p390_p1 = scmp.ne.s32.totalorder %s541_s4, %s389_s6  ;;  %p393_p2 = scmp.lt.u32.totalorder %s389_s6, %s541_s4 }
 0x296   :  { %p395_p3 = pnand %p393_p2, %p390_p1 }
 0x298   :  { %398 = shalt.err (!%p395_p3)
}
 0x299   :  { %280 = dma.vmem_to_hbm [thread:$0]  %s278_s27, 16, %s541_s4, [#allocation12]   ;;  %v244_v61 = vlaneseq }
 0x29a   :  { %s437_s12 = smov [#allocation10]  }
 0x29b   :  { %v245_v62 = vand.u32 127, %v244_v61  ;;  %v252_v63 = vshrl.u32 %v244_v61, 7  ;;  %s267_s13 = sshll.u32 %s437_s12, 4  ;;  %s268_s13 = int_to_ptr.vmem [resolvable:$true] %s267_s13 }
 0x29c   :  { %s399_s14 = scalar_lea.vmem %s268_s13, 16  ;;  %s403_s15 = scalar_lea.vmem %s268_s13, 32 }
 0x29d   :  { %vm246_vm1 = vcmp.lt.s32.totalorder %v245_v62, 31  ;;  %v253_v0 = vsub.s32 0, %v252_v63  ;;  %p400_p4 = scmp.ne.s32.totalorder %s268_s13, %s399_s14  ;;  %p404_p5 = scmp.lt.s32.totalorder %s268_s13, %s268_s13 }
 0x29e   :  { %v247_v1 = vsel %vm246_vm1, %v245_v62, 31  ;;  %p405_p6 = scmp.lt.s32.totalorder %s403_s15, %s399_s14 }
 0x2a0   :  { %p406_p7 = por %p405_p6, %p404_p5 }
 0x2a2   :  { %p407_p8 = pnand %p406_p7, %p400_p4 }
 0x310   :  { %v250_v2 = vpop.permute.xlu1 %249 }
 0x311   :  { %v254_v3 = vrot.slane %v250_v2, %v253_v0 }
 0x313   :  { %v255_v4 = vshra.s32 %v254_v3, %v247_v1 }
 0x315   :  { %v256_v5 = vand.u32 1, %v255_v4 }
 0x317   :  { %v257_v6 = vcvt.s32.f32 %v256_v5 }
 0x319   :  { %258 = vst [vmem:[#allocation10] sm:$0x1] %v257_v6 }
 0x31a   :  { %410 = shalt.err (!%p407_p8)
}
 0x31b   :  { %s411_s17 = scalar_lea.hbm %s540_s3, 16 }
 0x31c   :  { %p412_p9 = scmp.ne.s32.totalorder %s540_s3, %s411_s17  ;;  %p415_p10 = scmp.lt.u32.totalorder %s411_s17, %s540_s3 }
 0x31e   :  { %p417_p11 = pnand %p415_p10, %p412_p9 }
 0x320   :  { %420 = shalt.err (!%p417_p11)
}
 0x321   :  { %270 = dma.vmem_to_hbm [thread:$0]  %s268_s13, 16, %s540_s3, [#allocation6]  }
 0x322   :  { %425 = dma.done.wait [#allocation6], 16  }
 0x323   :  { %426 = vsyncadd [#allocation6], 4294967280 }
 0x324   :  { %427 = dma.done.wait [#allocation12], 16  }
 0x325   :  { %428 = vsyncadd [#allocation12], 4294967280 }
 0x326   :  { %287 = vsyncpa [#allocation5], 1 }
 0x327   :  { %288 = vsyncpa [#allocation8], 1 }
 0x328   :  { %289 = vsyncpa [#allocation6], 1 }
 0x329   :  { %290 = vsyncpa [#allocation12], 1 }

</bundles_post_ra>
